<compile_context>
chip_gen: v6e
topology: v6e:2x2x1
jax: 0.10.0
libtpu: 0.0.40
codegen_flags: <defaults>
</compile_context>

<pallas_src>
import functools

import jax
import jax.numpy as jnp
from jax.experimental import pallas as pl
from jax.experimental.pallas import tpu as pltpu


_VMEM_LIMIT = 48 << 20        # safe on v7x's 64 MiB physical VMEM; ample headroom on v5e/v6e.
_K_SINGLE_STEP_MAX = 8192     # full-K single grid step up to this (bf16 A+B blocks << VMEM).
EXPANSION = 1                 # BasicBlock.expansion


# ----------------------------------------------------------------------------
# helpers
# ----------------------------------------------------------------------------
def _round_up(x, m):
    return (x + m - 1) // m * m


def _cdiv(a, b):
    return -(-a // b)


def _pad2(x, rows, cols):
    r, c = x.shape
    if r == rows and c == cols:
        return x
    return jnp.pad(x, ((0, rows - r), (0, cols - c)))


# ----------------------------------------------------------------------------
# Pallas kernels
# ----------------------------------------------------------------------------
def _mm_kernel(a_ref, b_ref, bias_ref, o_ref, *, relu):
    # Single K step: out = maybe_relu(A @ B + bias), f32 math, store in o_ref.dtype (bf16/f32).
    out = jnp.dot(a_ref[...], b_ref[...], preferred_element_type=jnp.float32) + bias_ref[...]
    if relu:
        out = jnp.maximum(out, 0.0)
    o_ref[...] = out.astype(o_ref.dtype)


def _mm_res_kernel(a_ref, b_ref, bias_ref, res_ref, o_ref, *, relu):
    out = (jnp.dot(a_ref[...], b_ref[...], preferred_element_type=jnp.float32)
           + bias_ref[...] + res_ref[...].astype(jnp.float32))
    if relu:
        out = jnp.maximum(out, 0.0)
    o_ref[...] = out.astype(o_ref.dtype)


def _mm_acc_kernel(a_ref, b_ref, bias_ref, o_ref, acc_ref, *, relu):
    # Multi K-step fallback (Kp > _K_SINGLE_STEP_MAX): f32 VMEM accumulator across grid axis 2.
    @pl.when(pl.program_id(2) == 0)
    def _init():
        acc_ref[...] = jnp.zeros_like(acc_ref)

    acc_ref[...] += jnp.dot(a_ref[...], b_ref[...], preferred_element_type=jnp.float32)

    @pl.when(pl.program_id(2) == pl.num_programs(2) - 1)
    def _fin():
        out = acc_ref[...] + bias_ref[...]
        if relu:
            out = jnp.maximum(out, 0.0)
        o_ref[...] = out.astype(o_ref.dtype)


def _mm_acc_res_kernel(a_ref, b_ref, bias_ref, res_ref, o_ref, acc_ref, *, relu):
    @pl.when(pl.program_id(2) == 0)
    def _init():
        acc_ref[...] = jnp.zeros_like(acc_ref)

    acc_ref[...] += jnp.dot(a_ref[...], b_ref[...], preferred_element_type=jnp.float32)

    @pl.when(pl.program_id(2) == pl.num_programs(2) - 1)
    def _fin():
        out = acc_ref[...] + bias_ref[...] + res_ref[...].astype(jnp.float32)
        if relu:
            out = jnp.maximum(out, 0.0)
        o_ref[...] = out.astype(o_ref.dtype)


def _avgpool_kernel(x_ref, o_ref, *, inv_hw):
    o_ref[...] = jnp.sum(x_ref[...].astype(jnp.float32), axis=1) * inv_hw


# ----------------------------------------------------------------------------
# Pallas wrappers
# ----------------------------------------------------------------------------
def matmul_bias_act(a, b, bias, residual=None, relu=False, out_dtype=jnp.bfloat16):
    """maybe_relu(a @ b + bias (+ residual)).

    a: (M, Kp)  bf16, already K-padded to match b.
    b: (Kp, Np) bf16 (BN scale folded, K zero-padded at prep time).
    bias: (1, Np) f32.
    residual: optional (M, Np) bf16/f32.
    Returns (M, Np) in out_dtype.
    """
    M, Kp = a.shape
    Kp2, Np = b.shape
    assert Kp == Kp2 and bias.shape == (1, Np)

    # --- tile selection: pick tiles first, pad dims to a multiple of the tile ---
    tm = min(256, _round_up(M, 16))           # 16-row alignment for bf16 sublane packing
    Mp = _round_up(M, tm)
    if Np % 128 == 0:
        if Np % 256 == 0 and Np >= 512:
            tn = 256
        elif Np == 256:
            # if there is only one M tile, split N so megacore (v7x) still gets 2 tiles
            tn = 256 if Mp // tm >= 2 else 128
        else:
            tn = 128
    else:
        tn = Np                               # small/odd channel count: full-extent lane block
    if Kp <= _K_SINGLE_STEP_MAX:
        nk, tk, Kpp = 1, Kp, Kp               # single full-K step: no accumulator needed
    else:
        nk = _cdiv(Kp, _K_SINGLE_STEP_MAX)
        tk = _round_up(_cdiv(Kp, nk), 128)
        Kpp = nk * tk

    if a.dtype != jnp.bfloat16:
        a = a.astype(jnp.bfloat16)
    a_p = _pad2(a, Mp, Kpp)
    b_p = _pad2(b, Kpp, Np)

    operands = [a_p, b_p, bias]
    res_bytes = 0
    if nk == 1:
        grid = (Mp // tm, Np // tn)
        in_specs = [
            pl.BlockSpec((tm, tk), lambda i, j: (i, 0)),
            pl.BlockSpec((tk, tn), lambda i, j: (0, j)),
            pl.BlockSpec((1, tn), lambda i, j: (0, j)),
        ]
        out_spec = pl.BlockSpec((tm, tn), lambda i, j: (i, j))
        scratch = []
        sem = ("parallel", "parallel")
        if residual is None:
            kernel = functools.partial(_mm_kernel, relu=relu)
        else:
            r_p = _pad2(residual.astype(jnp.bfloat16), Mp, Np)
            operands.append(r_p)
            in_specs.append(pl.BlockSpec((tm, tn), lambda i, j: (i, j)))
            kernel = functools.partial(_mm_res_kernel, relu=relu)
            res_bytes = r_p.size * 2
    else:
        grid = (Mp // tm, Np // tn, nk)
        in_specs = [
            pl.BlockSpec((tm, tk), lambda i, j, k: (i, k)),
            pl.BlockSpec((tk, tn), lambda i, j, k: (k, j)),
            pl.BlockSpec((1, tn), lambda i, j, k: (0, j)),
        ]
        out_spec = pl.BlockSpec((tm, tn), lambda i, j, k: (i, j))
        scratch = [pltpu.VMEM((tm, tn), jnp.float32)]
        sem = ("parallel", "parallel", "arbitrary")
        if residual is None:
            kernel = functools.partial(_mm_acc_kernel, relu=relu)
        else:
            r_p = _pad2(residual.astype(jnp.bfloat16), Mp, Np)
            operands.append(r_p)
            in_specs.append(pl.BlockSpec((tm, tn), lambda i, j, k: (i, j)))
            kernel = functools.partial(_mm_acc_res_kernel, relu=relu)
            res_bytes = r_p.size * 2

    out = pl.pallas_call(
        kernel,
        out_shape=jax.ShapeDtypeStruct((Mp, Np), out_dtype),
        grid=grid,
        in_specs=in_specs,
        out_specs=out_spec,
        scratch_shapes=scratch,
        compiler_params=pltpu.CompilerParams(
            dimension_semantics=sem, vmem_limit_bytes=_VMEM_LIMIT),
        cost_estimate=pl.CostEstimate(
            flops=2 * Mp * Np * Kpp,
            transcendentals=0,
            bytes_accessed=(a_p.size + b_p.size) * 2 + bias.size * 4 + res_bytes
            + Mp * Np * jnp.dtype(out_dtype).itemsize),
    )(*operands)

    return out[:M] if Mp != M else out


def _im2col_bf16(x, kh, kw, stride, pad, k_pad_to):
    """x: (N,H,W,C) bf16 -> patches (N*Ho*Wo, k_pad_to) bf16 (K zero-pad folded into concat)."""
    N, H, W, C = x.shape
    Ho = (H + 2 * pad - kh) // stride + 1
    Wo = (W + 2 * pad - kw) // stride + 1
    xp = jnp.pad(x, ((0, 0), (pad, pad), (pad, pad), (0, 0))) if pad else x
    cols = [xp[:, i:i + stride * Ho:stride, j:j + stride * Wo:stride, :]
            for i in range(kh) for j in range(kw)]                       # tap-major
    K = kh * kw * C
    if k_pad_to > K:
        cols.append(jnp.zeros((N, Ho, Wo, k_pad_to - K), x.dtype))
    patches = jnp.concatenate(cols, axis=-1)                             # (N,Ho,Wo,Kp) bf16
    return patches.reshape(N * Ho * Wo, k_pad_to), Ho, Wo


def conv_bn(x, p, stride, pad, relu, residual=None):
    """Conv2d(bias=False) + folded BatchNorm (+residual) (+ReLU). x NHWC bf16; p from prep."""
    kh, kw, cin, cout, kp = p["kh"], p["kw"], p["cin"], p["cout"], p["kp"]
    Nb = x.shape[0]
    if kh == 1 and kw == 1 and pad == 0:
        xs = x[:, ::stride, ::stride, :] if stride > 1 else x
        Ho, Wo = xs.shape[1], xs.shape[2]
        a = xs.reshape(Nb * Ho * Wo, cin)
        if kp > cin:
            a = jnp.pad(a, ((0, 0), (0, kp - cin)))
    else:
        a, Ho, Wo = _im2col_bf16(x, kh, kw, stride, pad, kp)
    res2d = None if residual is None else residual.reshape(Nb * Ho * Wo, cout)
    out = matmul_bias_act(a, p["w"], p["b"], residual=res2d, relu=relu,
                          out_dtype=jnp.bfloat16)
    return out.reshape(Nb, Ho, Wo, cout)


def maxpool_3x3_s2(x):
    """MaxPool2d(kernel_size=3, stride=2, padding=1) on NHWC (bf16).

    Contiguous-slice pairwise-max tree (no strided gathers, x read once); left to fused XLA
    per the performance review instead of a separate Pallas call.
    """
    N, H, W, C = x.shape
    Ho = (H - 1) // 2 + 1
    Wo = (W - 1) // 2 + 1
    ph = 2 * Ho + 2 - (H + 2)
    pw = 2 * Wo + 2 - (W + 2)
    xp = jnp.pad(x, ((0, 0), (1, 1 + ph), (1, 1 + pw), (0, 0)),
                 constant_values=-jnp.inf)                    # (N, 2Ho+2, 2Wo+2, C)
    rp = xp.reshape(N, Ho + 1, 2, 2 * Wo + 2, C)
    rmax = jnp.maximum(jnp.max(rp, axis=2)[:, :Ho], rp[:, 1:, 0])     # rows 2h,2h+1,2h+2
    cp = rmax.reshape(N, Ho, Wo + 1, 2, C)
    out = jnp.maximum(jnp.max(cp, axis=3)[:, :, :Wo], cp[:, :, 1:, 0])  # cols 2w,2w+1,2w+2
    return out


def global_avgpool(x):
    """AdaptiveAvgPool2d((1,1)) + Flatten on NHWC bf16 -> (N, C) f32."""
    N, H, W, C = x.shape
    xr = x.reshape(N, H * W, C)
    return pl.pallas_call(
        functools.partial(_avgpool_kernel, inv_hw=1.0 / (H * W)),
        out_shape=jax.ShapeDtypeStruct((N, C), jnp.float32),
        compiler_params=pltpu.CompilerParams(vmem_limit_bytes=_VMEM_LIMIT),
    )(xr)


# ----------------------------------------------------------------------------
# parameters: raw init + one-time kernel-ready preparation (BN fold, transpose, bf16, K pad)
# ----------------------------------------------------------------------------
def init_resnet_params(key, block_list, num_classes):
    keys = iter(jax.random.split(key, 512))

    def conv_w(cout, cin, k):
        return 0.05 * jax.random.normal(next(keys), (cout, cin, k, k), jnp.float32)

    def bn(c):
        gamma = 1.0 + 0.1 * jax.random.normal(next(keys), (c,), jnp.float32)
        beta = 0.1 * jax.random.normal(next(keys), (c,), jnp.float32)
        mean = 0.1 * jax.random.normal(next(keys), (c,), jnp.float32)
        var = 0.5 + jax.random.uniform(next(keys), (c,), jnp.float32)
        return (gamma, beta, mean, var)

    raw = {"conv1_w": conv_w(64, 3, 7), "bn1": bn(64), "layers": []}
    in_ch = 64
    for ch, stride, depth in zip([64, 128, 256, 512], [1, 2, 2, 2], block_list):
        blocks = []
        for bi in range(depth):
            s = stride if bi == 0 else 1
            blk = {"stride": s,
                   "w1": conv_w(ch, in_ch, 3), "bn_1": bn(ch),
                   "w2": conv_w(ch, ch, 3), "bn_2": bn(ch)}
            if s != 1 or in_ch != ch * EXPANSION:
                blk["wd"] = conv_w(ch * EXPANSION, in_ch, 1)
                blk["bnd"] = bn(ch * EXPANSION)
            in_ch = ch * EXPANSION
            blocks.append(blk)
        raw["layers"].append(blocks)
    raw["fc_w"] = 0.05 * jax.random.normal(next(keys), (num_classes, 512 * EXPANSION), jnp.float32)
    raw["fc_b"] = 0.1 * jax.random.normal(next(keys), (num_classes,), jnp.float32)
    return raw


def _prep_conv_bn(w, gamma, beta, mean, var, eps=1e-5):
    scale = gamma / jnp.sqrt(var + eps)
    bias = beta - mean * scale
    Cout, Cin, kh, kw = w.shape
    w_f = w * scale[:, None, None, None]                       # fold BN scale into weights
    K = kh * kw * Cin
    Kp = _round_up(K, 128)
    wm = jnp.transpose(w_f, (2, 3, 1, 0)).reshape(K, Cout)     # tap-major, matches im2col
    if Kp > K:
        wm = jnp.pad(wm, ((0, Kp - K), (0, 0)))
    return {"w": wm.astype(jnp.bfloat16),
            "b": bias.reshape(1, Cout).astype(jnp.float32),
            "kh": kh, "kw": kw, "cin": Cin, "cout": Cout, "kp": Kp}


def prepare_resnet_params(raw):
    prep = {"conv1": _prep_conv_bn(raw["conv1_w"], *raw["bn1"]), "layers": []}
    for layer in raw["layers"]:
        blocks = []
        for blk in layer:
            p = {"stride": blk["stride"],
                 "c1": _prep_conv_bn(blk["w1"], *blk["bn_1"]),
                 "c2": _prep_conv_bn(blk["w2"], *blk["bn_2"])}
            if "wd" in blk:
                p["down"] = _prep_conv_bn(blk["wd"], *blk["bnd"])
            blocks.append(p)
        prep["layers"].append(blocks)
    prep["fc_w"] = raw["fc_w"].T.astype(jnp.bfloat16)          # (512, num_classes)
    prep["fc_b"] = raw["fc_b"].reshape(1, -1).astype(jnp.float32)
    return prep


# ----------------------------------------------------------------------------
# forward
# ----------------------------------------------------------------------------
def basic_block_forward(x, blk):
    stride = blk["stride"]
    if "down" in blk:
        shortcut = conv_bn(x, blk["down"], stride=stride, pad=0, relu=False)
    else:
        shortcut = x
    out = conv_bn(x, blk["c1"], stride=stride, pad=1, relu=True)
    # conv2 + bn2 + residual add + relu fused in one Pallas matmul epilogue.
    out = conv_bn(out, blk["c2"], stride=1, pad=1, relu=True, residual=shortcut)
    return out


def resnet_forward(params, x_nchw):
    # NCHW (PyTorch) -> NHWC, bf16 activations for all kernels.
    x = jnp.transpose(x_nchw, (0, 2, 3, 1)).astype(jnp.bfloat16)
    x = conv_bn(x, params["conv1"], stride=2, pad=3, relu=True)
    x = maxpool_3x3_s2(x)
    for layer in params["layers"]:
        for blk in layer:
            x = basic_block_forward(x, blk)
    feats = global_avgpool(x)                                  # (N, 512) f32
    logits = matmul_bias_act(feats.astype(jnp.bfloat16), params["fc_w"], params["fc_b"],
                             relu=False, out_dtype=jnp.float32)
    return logits


# ----------------------------------------------------------------------------
# main
# ----------------------------------------------------------------------------
if __name__ == "__main__":
    key = jax.random.PRNGKey(0)
    k_params, k_input = jax.random.split(key)

    BLOCK_LIST = [1, 1, 1, 1]   # small ResNet (BasicBlock) for the synthetic test
    NUM_CLASSES = 10
    N, C, H, W = 2, 3, 64, 64   # spatial must survive the 5 downsamplings

    raw = init_resnet_params(k_params, BLOCK_LIST, NUM_CLASSES)
    params = prepare_resnet_params(raw)   # fold/transpose/cast/pad weights once, outside forward
    x = jax.random.normal(k_input, (N, C, H, W), jnp.float32)

    logits = resnet_forward(params, x)
    logits = jax.block_until_ready(logits)

    assert logits.shape == (N, NUM_CLASSES), logits.shape
    assert bool(jnp.all(jnp.isfinite(logits)))
    print("KERNEL_OK")
</pallas_src>

<mosaic_0001>
module attributes {stable_mosaic.version = 11 : i64} {
  func.func @_mm_kernel(%arg0: i32, %arg1: i32, %arg2: memref<256x256xbf16, #tpu.memory_space<vmem>>, %arg3: memref<256x64xbf16, #tpu.memory_space<vmem>>, %arg4: memref<1x64xf32, #tpu.memory_space<vmem>>, %arg5: memref<256x64xbf16, #tpu.memory_space<vmem>>) attributes {dimension_semantics = [#tpu.dimension_semantics<parallel>, #tpu.dimension_semantics<parallel>], iteration_bounds = array<i64: 8, 1>, scalar_prefetch = 0 : i64, scratch_operands = 0 : i64, tpu.core_type = #tpu.core_type<tc>, window_params = [{transform_indices = @transform_0, window_bounds = array<i64: 256, 256>}, {transform_indices = @transform_1, window_bounds = array<i64: 256, 64>}, {transform_indices = @transform_2, window_bounds = array<i64: 1, 64>}, {transform_indices = @transform_3, window_bounds = array<i64: 256, 64>}]} {
    %c0 = arith.constant 0 : index
    %c0_0 = arith.constant 0 : index
    %0 = vector.load %arg2[%c0, %c0_0] : memref<256x256xbf16, #tpu.memory_space<vmem>>, vector<256x256xbf16>
    %c0_1 = arith.constant 0 : index
    %c0_2 = arith.constant 0 : index
    %1 = vector.load %arg3[%c0_1, %c0_2] : memref<256x64xbf16, #tpu.memory_space<vmem>>, vector<256x64xbf16>
    %cst = arith.constant dense<0.000000e+00> : vector<256x64xf32>
    %2 = tpu.matmul %0, %1, %cst {dimension_numbers = #tpu.dot_dimension_numbers<[1], [0], [0], [1], [0, 0, 1, 1], [], []>} : vector<256x256xbf16>, vector<256x64xbf16>, vector<256x64xf32> -> vector<256x64xf32>
    %c0_3 = arith.constant 0 : index
    %c0_4 = arith.constant 0 : index
    %3 = vector.load %arg4[%c0_3, %c0_4] : memref<1x64xf32, #tpu.memory_space<vmem>>, vector<1x64xf32>
    %4 = vector.broadcast %3 : vector<1x64xf32> to vector<256x64xf32>
    %5 = arith.addf %2, %4 : vector<256x64xf32>
    %cst_5 = arith.constant 0.000000e+00 : f32
    %6 = vector.broadcast %cst_5 : f32 to vector<256x64xf32>
    %7 = arith.maximumf %5, %6 : vector<256x64xf32>
    %8 = arith.truncf %7 : vector<256x64xf32> to vector<256x64xbf16>
    %c0_6 = arith.constant 0 : index
    %c0_7 = arith.constant 0 : index
    %9 = vector.load %arg5[%c0_6, %c0_7] : memref<256x64xbf16, #tpu.memory_space<vmem>>, vector<256x64xbf16>
    tpu.vector_store %arg5[%c0_6, %c0_7], %8 {strides = array<i32>} : memref<256x64xbf16, #tpu.memory_space<vmem>>, vector<256x64xbf16>,
    return
  }
  func.func @transform_0(%arg0: i32, %arg1: i32) -> (i32, i32) {
    %c0_i32 = arith.constant 0 : i32
    %c0_i32_0 = arith.constant 0 : i32
    return %arg0, %c0_i32 : i32, i32
  }
  func.func @transform_1(%arg0: i32, %arg1: i32) -> (i32, i32) {
    %c0_i32 = arith.constant 0 : i32
    %c0_i32_0 = arith.constant 0 : i32
    return %c0_i32, %arg1 : i32, i32
  }
  func.func @transform_2(%arg0: i32, %arg1: i32) -> (i32, i32) {
    %c0_i32 = arith.constant 0 : i32
    %c0_i32_0 = arith.constant 0 : i32
    return %c0_i32, %arg1 : i32, i32
  }
  func.func @transform_3(%arg0: i32, %arg1: i32) -> (i32, i32) {
    %c0_i32 = arith.constant 0 : i32
    return %arg0, %arg1 : i32, i32
  }
}

</mosaic_0001>

<bundles_post_ra>
// kernel: tpu_custom_call.1
= control target key start
LH: loop header
LB: loop body
LE: loop exit
PB: predicated region body
PF: predicated region fallthrough
CT: control target
= control target key end

     0   :  { %8 = vsyncpa [#allocation3], 0  ;;  %s1803_s0 = inlined_call_operand.hbm [shape: bf16[2048,256], index: 0, kind: input, shape index: {}]   ;;  %s1804_s1 = inlined_call_operand.vmem [shape: bf16[256,64], index: 1, kind: input, shape index: {}]   ;;  %s1805_s2 = inlined_call_operand.vmem [shape: f32[1,64], index: 2, kind: input, shape index: {}]   ;;  %s1806_s3 = inlined_call_operand.vmem [shape: bf16[2048,64], index: 3, kind: output, shape index: {}]  }
   0x1   :  { %10 = vsyncpa [#allocation3 + $0x1], 0  ;;  %s1523_s12 = smov 0   ;;  %s1525_s13 = smov 0  }
   0x2   :  { %s1527_s14 = smov 0   ;;  %s1529_s15 = smov 0  }
   0x3   :  { %s1531_s16 = smov 0   ;;  %s1533_s17 = smov 0  }
   0x4 LB: > { %s1040_s18 = sadd.s32 4294967295, %s1498_s17   ;;  %s28_s19 = sadd.s32 1, %s1494_s16  ;;  %s1498_s17 = sphi %s1533_s17, %s16_s17   ;;  %s1494_s16 = sphi %s1531_s16, %s1814_s16   ;;  %s1490_s15 = sphi %s1529_s15, %s1813_s15   ;;  %s1486_s14 = sphi %s1527_s14, %s1812_s14   ;;  %s1482_s13 = sphi %s1525_s13, %s1811_s13   ;;  %s1478_s12 = sphi %s1523_s12, %s1810_s12  }
   0x5   : > { %p30_p0 = scmp.ge.s32.totalorder %s28_s19, 8  ;;  %s35_s20 = sadd.s32 1, %s1486_s14 }
   0x6   : > { %p42_p1 = scmp.ne.s32.totalorder %s1486_s14, %s1482_s13  ;;  %p43_p2 = scmp.eq.s32.totalorder %s1498_s17, 0 }
   0x7   : > { %s1816_s19 = smov (%p30_p0, %s28_s19), 0  ;;  %p48_p4 = scmp.ne.s32.totalorder %s1482_s13, %s1478_s12 }
   0x8   : > { %p1559_p3 = por %p43_p2, %p42_p1  ;;  %s32_s22 = ssub.s32 %s1494_s16, %s1816_s19 }
   0x9   : > { %p49_p5 = scmp.eq.s32.totalorder %s1040_s18, 0  ;;  %p33_p6 = scmp.eq.s32.totalorder %s32_s22, 0 }
   0xa   : > { %p1305_p8 = scmp.lt.s32.totalorder %s1498_s17, 8  ;;  %s165_s25 = sand.u32 1, %s1486_s14  }
   0xb   : > { %p1566_p7 = por %p49_p5, %p48_p4  ;;  %s1138_s26 = sshll.u32 %s1494_s16, 12 }
   0xc   : > { %s1572_s24 = scalar_select %p33_p6, %s1486_s14, %s35_s20  }
   0xd   : > { %s1046_s27 = sshll.u32 %s165_s25, 8  ;;  %s176_s30 = scalar_lea.hbm %s1803_s0, %s1138_s26 }
   0xe   : > { %s169_s4 = scalar_lea.vmem [#allocation2], %s1046_s27  ;;  %p1581_p9 = pnand %p1305_p8, %p1559_p3 }
   0xf   : > { %s177_s5 = sshll.u32 %s169_s4, 4  ;;  %s166_s7 = scalar_lea.sflag [#allocation3], %s165_s25  ;;  %s178_s5 = int_to_ptr.vmem [resolvable:$true] %s177_s5 }
  0x10   : > { %p1422_p10 = pneg %p1581_p9  ;;  %s1433_s8 = scalar_lea.vmem %s178_s5, 4096 }
  0x11   : > { %p1434_p11 = scmp.ne.s32.totalorder %s178_s5, %s1433_s8  ;;  %s1500_s9 = smov [#allocation2]  }
  0x12   : > { %s1438_s10 = sshll.u32 %s1500_s9, 4  ;;  %s1439_s10 = int_to_ptr.vmem [resolvable:$false] %s1438_s10 }
  0x13   : > { %p1436_p12 = pnand %p1434_p11, %p1422_p10  ;;  %s1440_s11 = scalar_lea.vmem %s1439_s10, 8192 }
  0x14   : > { %p1441_p0 = scmp.lt.s32.totalorder %s178_s5, %s1439_s10  ;;  %p1442_p1 = scmp.lt.s32.totalorder %s1440_s11, %s1433_s8 }
  0x15   : > { %p1437_p13 = pneg %p1436_p12 }
  0x16   : > { %p1443_p2 = por %p1442_p1, %p1441_p0 }
  0x18   : > { %p1444_p3 = pnand %p1443_p2, %p1437_p13 }
  0x1a   : > { %1447 = shalt.err (!%p1444_p3)
}
  0x1b   : > { %s1501_s12 = smov 128   ;;  %s1502_s18 = smov 8  }
  0x1c   : > { %1304 = dma.hbm_to_vmem [thread:$0]  (!%p1581_p9), %s176_s30, 4096, %s178_s5, %s166_s7, %s1501_s12, %s1501_s12, %s1502_s18  }
  0x1d   : > { %p1050_p4 = scmp.ge.s32.totalorder %s1498_s17, 1  ;;  %p185_p5 = scmp.lt.s32.totalorder %s1498_s17, 9 }
  0x1f   : > { %p186_p6 = pnand %p1050_p4, %p185_p5 }
  0x20   : > { %s191_s20 = sand.u32 (!%p186_p6), 1, %s1482_s13  }
  0x21   : > { %189 = sbr.rel (%p186_p6) target bundleno = 336 (0x150), region = 32  ;;  %s1051_s21 = sshll.u32 (!%p186_p6), %s191_s20, 8 }
  0x22   : > { %s192_s22 = scalar_lea.sflag (!%p186_p6), [#allocation3], %s191_s20  ;;  %s1592_s25 = scalar_lea.vmem (!%p186_p6), [#allocation2], %s1051_s21 }
  0x26   : > { %1473 = dma.done.wait (%p1566_p7), %s192_s22, 4096  }
  0x27   : > { %1475 = vsyncadd (%p1566_p7), %s192_s22, 4294963200  ;;  %v1356_v0 = vld [vmem:[%s1804_s1 + $0x78] sm:$0xff]   ;;  %v1358_v2 = vld [vmem:[%s1804_s1 + $0x70] sm:$0xff]   ;;  %s1052_s11 = sshll.u32 %s1490_s15, 5  ;;  %vm894_vm0 = vcmask 519168  }
  0x28   : > { %v1357_v1 = vld [vmem:[%s1804_s1 + $0x38] sm:$0xff]   ;;  %1171 = vmatprep.subr.bf16.mxu0 %v1356_v0  ;;  %1283 = vmatprep.subr.bf16.mxu1 %v1356_v0  ;;  %v1359_v3 = vld [vmem:[%s1804_s1 + $0x30] sm:$0xff]   ;;  %v1360_v4 = vld [vmem:[%s1804_s1 + $0x68] sm:$0xff]   ;;  %p237_p7 = scmp.lt.s32.totalorder %s1052_s11, 255 }
  0x29   : > { %1172 = vmatpush3.bf16.msra.mxu0 %v1357_v1  ;;  %1291 = vmatpush3.bf16.msra.mxu1 %v1357_v1  ;;  %v1361_v5 = vld [vmem:[%s1804_s1 + $0x28] sm:$0xff]   ;;  %v1362_v6 = vld [vmem:[%s1804_s1 + $0x60] sm:$0xff]   ;;  %v1364_v8 = vld [vmem:[%s1804_s1 + $0x58] sm:$0xff]  }
  0x2a   : > { %1173 = vmatprep.subr.bf16.mxu0 %v1358_v2  ;;  %1284 = vmatprep.subr.bf16.mxu1 %v1358_v2  ;;  %v1363_v7 = vld [vmem:[%s1804_s1 + $0x20] sm:$0xff]   ;;  %v1365_v9 = vld [vmem:[%s1804_s1 + $0x18] sm:$0xff]   ;;  %v1366_v10 = vld [vmem:[%s1804_s1 + $0x50] sm:$0xff]   ;;  %s1818_s11 = smov (!%p237_p7, %s1052_s11), 255 }
  0x2b   : > { %v1374_v11 = vld [vmem:[%s1592_s25 + $0x4] ss:$8 sps:$4 sm:$0xff]   ;;  %v1367_v13 = vld [vmem:[%s1804_s1 + $0x10] sm:$0xff]   ;;  %v1372_v18 = vld [vmem:[%s1592_s25] ss:$8 sps:$4 sm:$0xff]   ;;  %s1053_s20 = sshll.u32 %s1818_s11, 2 }
  0x2c   : > { %v1377_v12 = vld [vmem:[%s1592_s25 + $0x84] ss:$8 sps:$4 sm:$0xff]   ;;  %605 = vmatprep.mubr.bf16.mxu0 %v1374_v11  ;;  %v1375_v19 = vld [vmem:[%s1592_s25 + $0x80] ss:$8 sps:$4 sm:$0xff]   ;;  %v1378_v20 = vld [vmem:[%s1592_s25 + $0x14] ss:$8 sps:$4 sm:$0xff]   ;;  %s1689_s21 = scalar_lea.vmem %s1806_s3, %s1053_s20 }
  0x2d   : > { %1174 = vmatpush3.bf16.msra.mxu0 %v1359_v3  ;;  %1292 = vmatpush3.bf16.msra.mxu1 %v1359_v3  ;;  %v1368_v14 = vld [vmem:[%s1804_s1 + $0x48] sm:$0xff]   ;;  %v1370_v16 = vld [vmem:[%s1804_s1 + $0x40] sm:$0xff]   ;;  %v1380_v21 = vld [vmem:[%s1592_s25 + $0x94] ss:$8 sps:$4 sm:$0xff]  }
  0x2e   : > { %1175 = vmatprep.subr.bf16.mxu0 %v1360_v4  ;;  %1285 = vmatprep.subr.bf16.mxu1 %v1360_v4  ;;  %v1369_v15 = vld [vmem:[%s1804_s1 + $0x8] sm:$0xff]   ;;  %v1371_v17 = vld [vmem:[%s1804_s1] sm:$0xff]   ;;  %v1382_v22 = vld [vmem:[%s1592_s25 + $0x10] ss:$8 sps:$4 sm:$0xff]  }
  0x2f   : > { %669 = vmatprep.mubr.bf16.mxu1 %v1377_v12  ;;  %v1383_v23 = vld [vmem:[%s1592_s25 + $0x90] ss:$8 sps:$4 sm:$0xff]   ;;  %v1384_v24 = vld [vmem:[%s1592_s25 + $0x24] ss:$8 sps:$4 sm:$0xff]   ;;  %v1388_v26 = vld [vmem:[%s1592_s25 + $0x20] ss:$8 sps:$4 sm:$0xff]  }
  0x30   : > { %v1386_v25 = vld [vmem:[%s1592_s25 + $0xa4] ss:$8 sps:$4 sm:$0xff]   ;;  %v1389_v27 = vld [vmem:[%s1592_s25 + $0xa0] ss:$8 sps:$4 sm:$0xff]   ;;  %v1390_v28 = vld [vmem:[%s1592_s25 + $0x34] ss:$8 sps:$4 sm:$0xff]  }
  0x31   : > { %1176 = vmatpush3.bf16.msra.mxu0 %v1361_v5  ;;  %1293 = vmatpush3.bf16.msra.mxu1 %v1361_v5  ;;  %v1392_v29 = vld [vmem:[%s1592_s25 + $0xb4] ss:$8 sps:$4 sm:$0xff]   ;;  %v1394_v30 = vld [vmem:[%s1592_s25 + $0x30] ss:$8 sps:$4 sm:$0xff]   ;;  %v1396_v32 = vld [vmem:[%s1592_s25 + $0x44] ss:$8 sps:$4 sm:$0xff]  }
  0x32   : > { %1177 = vmatprep.subr.bf16.mxu0 %v1362_v6  ;;  %1286 = vmatprep.subr.bf16.mxu1 %v1362_v6  ;;  %v1395_v31 = vld [vmem:[%s1592_s25 + $0xb0] ss:$8 sps:$4 sm:$0xff]   ;;  %v1398_v33 = vld [vmem:[%s1592_s25 + $0xc4] ss:$8 sps:$4 sm:$0xff]   ;;  %v1400_v34 = vld [vmem:[%s1592_s25 + $0x40] ss:$8 sps:$4 sm:$0xff]  }
  0x33   : > { %v1401_v35 = vld [vmem:[%s1592_s25 + $0xc0] ss:$8 sps:$4 sm:$0xff]   ;;  %v1402_v36 = vld [vmem:[%s1592_s25 + $0x54] ss:$8 sps:$4 sm:$0xff]   ;;  %v1406_v38 = vld [vmem:[%s1592_s25 + $0x50] ss:$8 sps:$4 sm:$0xff]  }
  0x34   : > { %v1404_v37 = vld [vmem:[%s1592_s25 + $0xd4] ss:$8 sps:$4 sm:$0xff]   ;;  %v1407_v39 = vld [vmem:[%s1592_s25 + $0xd0] ss:$8 sps:$4 sm:$0xff]   ;;  %v1408_v40 = vld [vmem:[%s1592_s25 + $0x64] ss:$8 sps:$4 sm:$0xff]  }
  0x35   : > { %1178 = vmatpush3.bf16.msra.mxu0 %v1363_v7  ;;  %1294 = vmatpush3.bf16.msra.mxu1 %v1363_v7  ;;  %v1410_v41 = vld [vmem:[%s1592_s25 + $0xe4] ss:$8 sps:$4 sm:$0xff]   ;;  %v1412_v42 = vld [vmem:[%s1592_s25 + $0x60] ss:$8 sps:$4 sm:$0xff]   ;;  %v1414_v44 = vld [vmem:[%s1592_s25 + $0x74] ss:$8 sps:$4 sm:$0xff]  }
  0x36   : > { %1179 = vmatprep.subr.bf16.mxu0 %v1364_v8  ;;  %1287 = vmatprep.subr.bf16.mxu1 %v1364_v8  ;;  %v1413_v43 = vld [vmem:[%s1592_s25 + $0xe0] ss:$8 sps:$4 sm:$0xff]   ;;  %v1416_v45 = vld [vmem:[%s1592_s25 + $0xf4] ss:$8 sps:$4 sm:$0xff]   ;;  %v1418_v46 = vld [vmem:[%s1592_s25 + $0x70] ss:$8 sps:$4 sm:$0xff]  }
  0x37   : > { %v1419_v47 = vld [vmem:[%s1592_s25 + $0xf0] ss:$8 sps:$4 sm:$0xff]   ;;  %v1682_v50 = vld [vmem:[%s1805_s2] ss:$0 sm:$0xff] }
  0x39   : > { %1180 = vmatpush3.bf16.msra.mxu0 %v1365_v9  ;;  %1295 = vmatpush3.bf16.msra.mxu1 %v1365_v9 }
  0x3a   : > { %1181 = vmatprep.subr.bf16.mxu0 %v1366_v10  ;;  %1288 = vmatprep.subr.bf16.mxu1 %v1366_v10 }
  0x3d   : > { %1182 = vmatpush3.bf16.msra.mxu0 %v1367_v13  ;;  %1296 = vmatpush3.bf16.msra.mxu1 %v1367_v13 }
  0x3e   : > { %1183 = vmatprep.subr.bf16.mxu0 %v1368_v14  ;;  %1289 = vmatprep.subr.bf16.mxu1 %v1368_v14 }
  0x41   : > { %1184 = vmatpush3.bf16.msra.mxu0 %v1369_v15  ;;  %1297 = vmatpush3.bf16.msra.mxu1 %v1369_v15 }
  0x42   : > { %1185 = vmatprep.subr.bf16.mxu0 %v1370_v16  ;;  %1290 = vmatprep.subr.bf16.mxu1 %v1370_v16 }
  0x45   : > { %1186 = vmatpush3.bf16.msra.mxu0 %v1371_v17  ;;  %1298 = vmatpush3.bf16.msra.mxu1 %v1371_v17 }
  0x48   : > { %606 = vmatmul.mubr.bf16.vlgmr.msra.gmra.mxu0 %v1372_v18  ;;  %670 = vmatmul.mubr.bf16.vlgmr.msra.gmra.mxu1 %v1375_v19 }
  0x49   : > { %613 = vmatprep.mubr.bf16.mxu0 %v1378_v20  ;;  %677 = vmatprep.mubr.bf16.mxu1 %v1380_v21 }
  0x50   : > { %614 = vmatmul.mubr.bf16.gmra.mxu0 %v1382_v22  ;;  %678 = vmatmul.mubr.bf16.gmra.mxu1 %v1383_v23 }
  0x51   : > { %621 = vmatprep.mubr.bf16.mxu0 %v1384_v24  ;;  %685 = vmatprep.mubr.bf16.mxu1 %v1386_v25 }
  0x58   : > { %622 = vmatmul.mubr.bf16.gmra.mxu0 %v1388_v26  ;;  %686 = vmatmul.mubr.bf16.gmra.mxu1 %v1389_v27 }
  0x59   : > { %629 = vmatprep.mubr.bf16.mxu0 %v1390_v28  ;;  %693 = vmatprep.mubr.bf16.mxu1 %v1392_v29 }
  0x60   : > { %630 = vmatmul.mubr.bf16.gmra.mxu0 %v1394_v30  ;;  %694 = vmatmul.mubr.bf16.gmra.mxu1 %v1395_v31 }
  0x61   : > { %637 = vmatprep.mubr.bf16.mxu0 %v1396_v32  ;;  %701 = vmatprep.mubr.bf16.mxu1 %v1398_v33 }
  0x68   : > { %638 = vmatmul.mubr.bf16.gmra.mxu0 %v1400_v34  ;;  %702 = vmatmul.mubr.bf16.gmra.mxu1 %v1401_v35 }
  0x69   : > { %645 = vmatprep.mubr.bf16.mxu0 %v1402_v36  ;;  %709 = vmatprep.mubr.bf16.mxu1 %v1404_v37 }
  0x70   : > { %646 = vmatmul.mubr.bf16.gmra.mxu0 %v1406_v38  ;;  %710 = vmatmul.mubr.bf16.gmra.mxu1 %v1407_v39 }
  0x71   : > { %653 = vmatprep.mubr.bf16.mxu0 %v1408_v40  ;;  %717 = vmatprep.mubr.bf16.mxu1 %v1410_v41 }
  0x78   : > { %654 = vmatmul.mubr.bf16.gmra.mxu0 %v1412_v42  ;;  %718 = vmatmul.mubr.bf16.gmra.mxu1 %v1413_v43 }
  0x79   : > { %661 = vmatprep.mubr.bf16.mxu0 %v1414_v44  ;;  %725 = vmatprep.mubr.bf16.mxu1 %v1416_v45 }
  0x80   : > { %662 = vmatmul.mubr.bf16.gmra.mxu0 %v1418_v46  ;;  %726 = vmatmul.mubr.bf16.gmra.mxu1 %v1419_v47 }
 0x108   : > { %v1187_v48 = vpop.f32.mrf.mxu0  ;;  %v1235_v49 = vpop.f32.mrf.mxu1 }
 0x10a   : > { %v1188_v51 = vpop.f32.mrf.mxu0  ;;  %v1236_v52 = vpop.f32.mrf.mxu1 }
 0x10b   : > { %v1189_v53 = vadd.f32 %v1188_v51, %v1187_v48  ;;  %v1237_v54 = vadd.f32 %v1236_v52, %v1235_v49 }
 0x10c   : > { %v1190_v55 = vpop.f32.mrf.mxu0  ;;  %v1238_v56 = vpop.f32.mrf.mxu1 }
 0x10d   : > { %v608_v57 = vadd.f32 %v1189_v53, %v1682_v50  ;;  %v672_v58 = vadd.f32 %v1237_v54, %v1682_v50 }
 0x10e   : > { %v1191_v59 = vpop.f32.mrf.mxu0  ;;  %v1239_v60 = vpop.f32.mrf.mxu1 }
 0x10f   : > { %v734_v61 = vmax.f32 %v608_v57, 0.0  ;;  %v750_v62 = vmax.f32 %v672_v58, 0.0  ;;  %v1192_v63 = vadd.f32 %v1191_v59, %v1190_v55  ;;  %v1240_v0 = vadd.f32 %v1239_v60, %v1238_v56 }
 0x110   : > { %v1193_v1 = vpop.f32.mrf.mxu0  ;;  %v1241_v2 = vpop.f32.mrf.mxu1 }
 0x111   : > { %v1139_v3 = vpack.c.bf16 %v734_v61, %v734_v61  ;;  %v1155_v4 = vpack.c.bf16 %v750_v62, %v750_v62  ;;  %v611_v5 = vadd.f32 %v1192_v63, %v1682_v50  ;;  %v675_v6 = vadd.f32 %v1240_v0, %v1682_v50 }
 0x112   : > { %v1194_v7 = vpop.f32.mrf.mxu0  ;;  %v1242_v8 = vpop.f32.mrf.mxu1 }
 0x113   : > { %895 = vst.msk [vmem:[%s1689_s21] sm:$0xf] %vm894_vm0, %v1139_v3  ;;  %911 = vst.msk [vmem:[%s1689_s21 + $0x40] sm:$0xf] %vm894_vm0, %v1155_v4  ;;  %v735_v9 = vmax.f32 %v611_v5, 0.0  ;;  %v751_v10 = vmax.f32 %v675_v6, 0.0  ;;  %v1195_v11 = vadd.f32 %v1194_v7, %v1193_v1  ;;  %v1243_v12 = vadd.f32 %v1242_v8, %v1241_v2 }
 0x114   : > { %v1196_v13 = vpop.f32.mrf.mxu0  ;;  %v1244_v14 = vpop.f32.mrf.mxu1 }
 0x115   : > { %v1140_v15 = vpack.c.bf16 %v735_v9, %v735_v9  ;;  %v1156_v16 = vpack.c.bf16 %v751_v10, %v751_v10  ;;  %v616_v17 = vadd.f32 %v1195_v11, %v1682_v50  ;;  %v680_v18 = vadd.f32 %v1243_v12, %v1682_v50 }
 0x116   : > { %v1197_v19 = vpop.f32.mrf.mxu0  ;;  %v1245_v20 = vpop.f32.mrf.mxu1 }
 0x117   : > { %896 = vst.msk [vmem:[%s1689_s21 + $0x4] sm:$0xf] %vm894_vm0, %v1140_v15  ;;  %912 = vst.msk [vmem:[%s1689_s21 + $0x44] sm:$0xf] %vm894_vm0, %v1156_v16  ;;  %v736_v21 = vmax.f32 %v616_v17, 0.0  ;;  %v752_v22 = vmax.f32 %v680_v18, 0.0  ;;  %v1198_v23 = vadd.f32 %v1197_v19, %v1196_v13  ;;  %v1246_v24 = vadd.f32 %v1245_v20, %v1244_v14 }
 0x118   : > { %v1199_v25 = vpop.f32.mrf.mxu0  ;;  %v1247_v26 = vpop.f32.mrf.mxu1 }
 0x119   : > { %v1141_v27 = vpack.c.bf16 %v736_v21, %v736_v21  ;;  %v1157_v28 = vpack.c.bf16 %v752_v22, %v752_v22  ;;  %v619_v29 = vadd.f32 %v1198_v23, %v1682_v50  ;;  %v683_v30 = vadd.f32 %v1246_v24, %v1682_v50 }
 0x11a   : > { %v1200_v31 = vpop.f32.mrf.mxu0  ;;  %v1248_v32 = vpop.f32.mrf.mxu1 }
 0x11b   : > { %897 = vst.msk [vmem:[%s1689_s21 + $0x8] sm:$0xf] %vm894_vm0, %v1141_v27  ;;  %913 = vst.msk [vmem:[%s1689_s21 + $0x48] sm:$0xf] %vm894_vm0, %v1157_v28  ;;  %v737_v33 = vmax.f32 %v619_v29, 0.0  ;;  %v753_v34 = vmax.f32 %v683_v30, 0.0  ;;  %v1201_v35 = vadd.f32 %v1200_v31, %v1199_v25  ;;  %v1249_v36 = vadd.f32 %v1248_v32, %v1247_v26 }
 0x11c   : > { %v1202_v37 = vpop.f32.mrf.mxu0  ;;  %v1250_v38 = vpop.f32.mrf.mxu1 }
 0x11d   : > { %v1142_v39 = vpack.c.bf16 %v737_v33, %v737_v33  ;;  %v1158_v40 = vpack.c.bf16 %v753_v34, %v753_v34  ;;  %v624_v41 = vadd.f32 %v1201_v35, %v1682_v50  ;;  %v688_v42 = vadd.f32 %v1249_v36, %v1682_v50 }
 0x11e   : > { %v1203_v43 = vpop.f32.mrf.mxu0  ;;  %v1251_v44 = vpop.f32.mrf.mxu1 }
 0x11f   : > { %898 = vst.msk [vmem:[%s1689_s21 + $0xc] sm:$0xf] %vm894_vm0, %v1142_v39  ;;  %914 = vst.msk [vmem:[%s1689_s21 + $0x4c] sm:$0xf] %vm894_vm0, %v1158_v40  ;;  %v738_v45 = vmax.f32 %v624_v41, 0.0  ;;  %v754_v46 = vmax.f32 %v688_v42, 0.0  ;;  %v1204_v47 = vadd.f32 %v1203_v43, %v1202_v37  ;;  %v1252_v48 = vadd.f32 %v1251_v44, %v1250_v38 }
 0x120   : > { %v1205_v49 = vpop.f32.mrf.mxu0  ;;  %v1253_v51 = vpop.f32.mrf.mxu1 }
 0x121   : > { %v1143_v52 = vpack.c.bf16 %v738_v45, %v738_v45  ;;  %v1159_v53 = vpack.c.bf16 %v754_v46, %v754_v46  ;;  %v627_v54 = vadd.f32 %v1204_v47, %v1682_v50  ;;  %v691_v55 = vadd.f32 %v1252_v48, %v1682_v50 }
 0x122   : > { %v1206_v56 = vpop.f32.mrf.mxu0  ;;  %v1254_v57 = vpop.f32.mrf.mxu1 }
 0x123   : > { %899 = vst.msk [vmem:[%s1689_s21 + $0x10] sm:$0xf] %vm894_vm0, %v1143_v52  ;;  %915 = vst.msk [vmem:[%s1689_s21 + $0x50] sm:$0xf] %vm894_vm0, %v1159_v53  ;;  %v739_v58 = vmax.f32 %v627_v54, 0.0  ;;  %v755_v59 = vmax.f32 %v691_v55, 0.0  ;;  %v1207_v60 = vadd.f32 %v1206_v56, %v1205_v49  ;;  %v1255_v61 = vadd.f32 %v1254_v57, %v1253_v51 }
 0x124   : > { %v1208_v62 = vpop.f32.mrf.mxu0  ;;  %v1256_v63 = vpop.f32.mrf.mxu1 }
 0x125   : > { %v1144_v0 = vpack.c.bf16 %v739_v58, %v739_v58  ;;  %v1160_v1 = vpack.c.bf16 %v755_v59, %v755_v59  ;;  %v632_v2 = vadd.f32 %v1207_v60, %v1682_v50  ;;  %v696_v3 = vadd.f32 %v1255_v61, %v1682_v50 }
 0x126   : > { %v1209_v4 = vpop.f32.mrf.mxu0  ;;  %v1257_v5 = vpop.f32.mrf.mxu1 }
 0x127   : > { %900 = vst.msk [vmem:[%s1689_s21 + $0x14] sm:$0xf] %vm894_vm0, %v1144_v0  ;;  %916 = vst.msk [vmem:[%s1689_s21 + $0x54] sm:$0xf] %vm894_vm0, %v1160_v1  ;;  %v740_v6 = vmax.f32 %v632_v2, 0.0  ;;  %v756_v7 = vmax.f32 %v696_v3, 0.0  ;;  %v1210_v8 = vadd.f32 %v1209_v4, %v1208_v62  ;;  %v1258_v9 = vadd.f32 %v1257_v5, %v1256_v63 }
 0x128   : > { %v1211_v10 = vpop.f32.mrf.mxu0  ;;  %v1259_v11 = vpop.f32.mrf.mxu1 }
 0x129   : > { %v1145_v12 = vpack.c.bf16 %v740_v6, %v740_v6  ;;  %v1161_v13 = vpack.c.bf16 %v756_v7, %v756_v7  ;;  %v635_v14 = vadd.f32 %v1210_v8, %v1682_v50  ;;  %v699_v15 = vadd.f32 %v1258_v9, %v1682_v50 }
 0x12a   : > { %v1212_v16 = vpop.f32.mrf.mxu0  ;;  %v1260_v17 = vpop.f32.mrf.mxu1 }
 0x12b   : > { %901 = vst.msk [vmem:[%s1689_s21 + $0x18] sm:$0xf] %vm894_vm0, %v1145_v12  ;;  %917 = vst.msk [vmem:[%s1689_s21 + $0x58] sm:$0xf] %vm894_vm0, %v1161_v13  ;;  %v741_v18 = vmax.f32 %v635_v14, 0.0  ;;  %v757_v19 = vmax.f32 %v699_v15, 0.0  ;;  %v1213_v20 = vadd.f32 %v1212_v16, %v1211_v10  ;;  %v1261_v21 = vadd.f32 %v1260_v17, %v1259_v11 }
 0x12c   : > { %v1214_v22 = vpop.f32.mrf.mxu0  ;;  %v1262_v23 = vpop.f32.mrf.mxu1 }
 0x12d   : > { %v1146_v24 = vpack.c.bf16 %v741_v18, %v741_v18  ;;  %v1162_v25 = vpack.c.bf16 %v757_v19, %v757_v19  ;;  %v640_v26 = vadd.f32 %v1213_v20, %v1682_v50  ;;  %v704_v27 = vadd.f32 %v1261_v21, %v1682_v50 }
 0x12e   : > { %v1215_v28 = vpop.f32.mrf.mxu0  ;;  %v1263_v29 = vpop.f32.mrf.mxu1 }
 0x12f   : > { %902 = vst.msk [vmem:[%s1689_s21 + $0x1c] sm:$0xf] %vm894_vm0, %v1146_v24  ;;  %918 = vst.msk [vmem:[%s1689_s21 + $0x5c] sm:$0xf] %vm894_vm0, %v1162_v25  ;;  %v742_v30 = vmax.f32 %v640_v26, 0.0  ;;  %v758_v31 = vmax.f32 %v704_v27, 0.0  ;;  %v1216_v32 = vadd.f32 %v1215_v28, %v1214_v22  ;;  %v1264_v33 = vadd.f32 %v1263_v29, %v1262_v23 }
 0x130   : > { %v1217_v34 = vpop.f32.mrf.mxu0  ;;  %v1265_v35 = vpop.f32.mrf.mxu1 }
 0x131   : > { %v1147_v36 = vpack.c.bf16 %v742_v30, %v742_v30  ;;  %v1163_v37 = vpack.c.bf16 %v758_v31, %v758_v31  ;;  %v643_v38 = vadd.f32 %v1216_v32, %v1682_v50  ;;  %v707_v39 = vadd.f32 %v1264_v33, %v1682_v50 }
 0x132   : > { %v1218_v40 = vpop.f32.mrf.mxu0  ;;  %v1266_v41 = vpop.f32.mrf.mxu1 }
 0x133   : > { %903 = vst.msk [vmem:[%s1689_s21 + $0x20] sm:$0xf] %vm894_vm0, %v1147_v36  ;;  %919 = vst.msk [vmem:[%s1689_s21 + $0x60] sm:$0xf] %vm894_vm0, %v1163_v37  ;;  %v743_v42 = vmax.f32 %v643_v38, 0.0  ;;  %v759_v43 = vmax.f32 %v707_v39, 0.0  ;;  %v1219_v44 = vadd.f32 %v1218_v40, %v1217_v34  ;;  %v1267_v45 = vadd.f32 %v1266_v41, %v1265_v35 }
 0x134   : > { %v1220_v46 = vpop.f32.mrf.mxu0  ;;  %v1268_v47 = vpop.f32.mrf.mxu1 }
 0x135   : > { %v1148_v48 = vpack.c.bf16 %v743_v42, %v743_v42  ;;  %v1164_v49 = vpack.c.bf16 %v759_v43, %v759_v43  ;;  %v648_v51 = vadd.f32 %v1219_v44, %v1682_v50  ;;  %v712_v52 = vadd.f32 %v1267_v45, %v1682_v50 }
 0x136   : > { %v1221_v53 = vpop.f32.mrf.mxu0  ;;  %v1269_v54 = vpop.f32.mrf.mxu1 }
 0x137   : > { %904 = vst.msk [vmem:[%s1689_s21 + $0x24] sm:$0xf] %vm894_vm0, %v1148_v48  ;;  %920 = vst.msk [vmem:[%s1689_s21 + $0x64] sm:$0xf] %vm894_vm0, %v1164_v49  ;;  %v744_v55 = vmax.f32 %v648_v51, 0.0  ;;  %v760_v56 = vmax.f32 %v712_v52, 0.0  ;;  %v1222_v57 = vadd.f32 %v1221_v53, %v1220_v46  ;;  %v1270_v58 = vadd.f32 %v1269_v54, %v1268_v47 }
 0x138   : > { %v1223_v59 = vpop.f32.mrf.mxu0  ;;  %v1271_v60 = vpop.f32.mrf.mxu1 }
 0x139   : > { %v1149_v61 = vpack.c.bf16 %v744_v55, %v744_v55  ;;  %v1165_v62 = vpack.c.bf16 %v760_v56, %v760_v56  ;;  %v651_v63 = vadd.f32 %v1222_v57, %v1682_v50  ;;  %v715_v0 = vadd.f32 %v1270_v58, %v1682_v50 }
 0x13a   : > { %v1224_v1 = vpop.f32.mrf.mxu0  ;;  %v1272_v2 = vpop.f32.mrf.mxu1 }
 0x13b   : > { %905 = vst.msk [vmem:[%s1689_s21 + $0x28] sm:$0xf] %vm894_vm0, %v1149_v61  ;;  %921 = vst.msk [vmem:[%s1689_s21 + $0x68] sm:$0xf] %vm894_vm0, %v1165_v62  ;;  %v745_v3 = vmax.f32 %v651_v63, 0.0  ;;  %v761_v4 = vmax.f32 %v715_v0, 0.0  ;;  %v1225_v5 = vadd.f32 %v1224_v1, %v1223_v59  ;;  %v1273_v6 = vadd.f32 %v1272_v2, %v1271_v60 }
 0x13c   : > { %v1226_v7 = vpop.f32.mrf.mxu0  ;;  %v1274_v8 = vpop.f32.mrf.mxu1 }
 0x13d   : > { %v1150_v9 = vpack.c.bf16 %v745_v3, %v745_v3  ;;  %v1166_v10 = vpack.c.bf16 %v761_v4, %v761_v4  ;;  %v656_v11 = vadd.f32 %v1225_v5, %v1682_v50  ;;  %v720_v12 = vadd.f32 %v1273_v6, %v1682_v50 }
 0x13e   : > { %v1227_v13 = vpop.f32.mrf.mxu0  ;;  %v1275_v14 = vpop.f32.mrf.mxu1 }
 0x13f   : > { %906 = vst.msk [vmem:[%s1689_s21 + $0x2c] sm:$0xf] %vm894_vm0, %v1150_v9  ;;  %922 = vst.msk [vmem:[%s1689_s21 + $0x6c] sm:$0xf] %vm894_vm0, %v1166_v10  ;;  %v746_v15 = vmax.f32 %v656_v11, 0.0  ;;  %v762_v16 = vmax.f32 %v720_v12, 0.0  ;;  %v1228_v17 = vadd.f32 %v1227_v13, %v1226_v7  ;;  %v1276_v18 = vadd.f32 %v1275_v14, %v1274_v8 }
 0x140   : > { %v1229_v19 = vpop.f32.mrf.mxu0  ;;  %v1277_v20 = vpop.f32.mrf.mxu1 }
 0x141   : > { %v1151_v21 = vpack.c.bf16 %v746_v15, %v746_v15  ;;  %v1167_v22 = vpack.c.bf16 %v762_v16, %v762_v16  ;;  %v659_v23 = vadd.f32 %v1228_v17, %v1682_v50  ;;  %v723_v24 = vadd.f32 %v1276_v18, %v1682_v50 }
 0x142   : > { %v1230_v25 = vpop.f32.mrf.mxu0  ;;  %v1278_v26 = vpop.f32.mrf.mxu1 }
 0x143   : > { %907 = vst.msk [vmem:[%s1689_s21 + $0x30] sm:$0xf] %vm894_vm0, %v1151_v21  ;;  %923 = vst.msk [vmem:[%s1689_s21 + $0x70] sm:$0xf] %vm894_vm0, %v1167_v22  ;;  %v747_v27 = vmax.f32 %v659_v23, 0.0  ;;  %v763_v28 = vmax.f32 %v723_v24, 0.0  ;;  %v1231_v29 = vadd.f32 %v1230_v25, %v1229_v19  ;;  %v1279_v30 = vadd.f32 %v1278_v26, %v1277_v20 }
 0x144   : > { %v1232_v31 = vpop.f32.mrf.mxu0  ;;  %v1280_v32 = vpop.f32.mrf.mxu1 }
 0x145   : > { %v1152_v33 = vpack.c.bf16 %v747_v27, %v747_v27  ;;  %v1168_v34 = vpack.c.bf16 %v763_v28, %v763_v28  ;;  %v664_v35 = vadd.f32 %v1231_v29, %v1682_v50  ;;  %v728_v36 = vadd.f32 %v1279_v30, %v1682_v50 }
 0x146   : > { %v1233_v37 = vpop.f32.mrf.mxu0  ;;  %v1281_v38 = vpop.f32.mrf.mxu1 }
 0x147   : > { %908 = vst.msk [vmem:[%s1689_s21 + $0x34] sm:$0xf] %vm894_vm0, %v1152_v33  ;;  %924 = vst.msk [vmem:[%s1689_s21 + $0x74] sm:$0xf] %vm894_vm0, %v1168_v34  ;;  %v748_v39 = vmax.f32 %v664_v35, 0.0  ;;  %v764_v40 = vmax.f32 %v728_v36, 0.0  ;;  %v1234_v41 = vadd.f32 %v1233_v37, %v1232_v31  ;;  %v1282_v42 = vadd.f32 %v1281_v38, %v1280_v32 }
 0x149   : > { %v1153_v43 = vpack.c.bf16 %v748_v39, %v748_v39  ;;  %v1169_v44 = vpack.c.bf16 %v764_v40, %v764_v40  ;;  %v667_v45 = vadd.f32 %v1234_v41, %v1682_v50  ;;  %v731_v46 = vadd.f32 %v1282_v42, %v1682_v50 }
 0x14b   : > { %909 = vst.msk [vmem:[%s1689_s21 + $0x38] sm:$0xf] %vm894_vm0, %v1153_v43  ;;  %925 = vst.msk [vmem:[%s1689_s21 + $0x78] sm:$0xf] %vm894_vm0, %v1169_v44  ;;  %v749_v47 = vmax.f32 %v667_v45, 0.0  ;;  %v765_v48 = vmax.f32 %v731_v46, 0.0 }
 0x14d   : > { %v1154_v49 = vpack.c.bf16 %v749_v47, %v749_v47  ;;  %v1170_v51 = vpack.c.bf16 %v765_v48, %v765_v48 }
 0x14f   : > { %910 = vst.msk [vmem:[%s1689_s21 + $0x3c] sm:$0xf] %vm894_vm0, %v1154_v49  ;;  %926 = vst.msk [vmem:[%s1689_s21 + $0x7c] sm:$0xf] %vm894_vm0, %v1170_v51 }
 0x150 PF: > { %s16_s17 = sadd.s32 1, %s1498_s17   ;;  %s1810_s12 = smov %s1482_s13 }
 0x151   : > { %p13_p8 = scmp.ge.s32.totalorder %s16_s17, 10   ;;  %s1811_s13 = smov %s1486_s14 }
 0x152   : > { %s1812_s14 = smov %s1572_s24  ;;  %s1813_s15 = smov %s1494_s16 }
 0x153   : > { %s1814_s16 = smov %s1816_s19  ;;  %15 = sbr.rel (!%p13_p8) target bundleno = 4 (0x4), region = 78 }
 0x158   :  { %955 = vsyncpa [#allocation3], 1 }
 0x159   :  { %957 = vsyncpa [#allocation3 + $0x1], 1 }

</bundles_post_ra>
